<compile_context>
chip_gen: v7x
topology: tpu7x:2x2x1
jax: 0.10.0
libtpu: 0.0.40
codegen_flags: <defaults>
</compile_context>

<pallas_src>
import functools
import math

import jax
import jax.numpy as jnp
from jax import lax
from jax.experimental import pallas as pl
from jax.experimental.pallas import tpu as pltpu


# ----------------------------------------------------------------------------
# Fused kernel: projections + multi-head attention for one (batch, q-tile)
# ----------------------------------------------------------------------------
def _fused_cross_attn_kernel(x_ref, y_ref, wq_ref, wk_ref, wv_ref,
                             o_ref, k_scr, v_scr, *, n_heads):
    E = x_ref.shape[-1]
    d = E // n_heads
    dn = (((1,), (1,)), ((), ()))        # contract last dim of both operands

    # --- K/V projection: once per batch (first q-tile), cached in VMEM scratch
    @pl.when(pl.program_id(1) == 0)
    def _():
        yb = y_ref[0]                                        # (n_kv, E) bf16
        k = lax.dot_general(yb, wk_ref[...], dn,
                            preferred_element_type=jnp.float32)
        v = lax.dot_general(yb, wv_ref[...], dn,
                            preferred_element_type=jnp.float32)
        k_scr[...] = k.astype(k_scr.dtype)                   # head-outer, bf16
        v_scr[...] = v.astype(v_scr.dtype)                   # head-outer, bf16

    # --- Q projection (1/sqrt(d) already folded into wq in the wrapper)
    xb = x_ref[0]                                            # (tq, E) bf16
    q = lax.dot_general(xb, wq_ref[...], dn,
                        preferred_element_type=jnp.float32)  # head-outer
    q = q.astype(jnp.bfloat16)                               # MXU operand dtype

    k_all = k_scr[...]                                       # (n_kv, E) bf16
    v_all = v_scr[...]                                       # (n_kv, E) bf16
    tq = xb.shape[0]

    outs = []
    # TODO(synk): for large n_heads replace the static unroll with a
    # lax.fori_loop(unroll=True) / batched dot_general so per-head score/prob
    # live ranges stay bounded (vreg pressure).
    for h in range(n_heads):
        qh = q[:, h * d:(h + 1) * d]                         # (tq,   d)
        kh = k_all[:, h * d:(h + 1) * d]                     # (n_kv, d)
        vh = v_all[:, h * d:(h + 1) * d]                     # (n_kv, d)
        s = lax.dot_general(qh, kh, dn,
                            preferred_element_type=jnp.float32)  # (tq, n_kv) f32
        m = jnp.max(s, axis=-1, keepdims=True)
        p = jnp.exp(s - m)
        denom = jnp.sum(p, axis=-1, keepdims=True)
        o_h = jnp.dot(p.astype(jnp.bfloat16), vh,
                      preferred_element_type=jnp.float32)        # (tq, d) f32
        # Normalize on the d-wide output slice (tq*d divides, exact reciprocal).
        outs.append(o_h / denom)

    # Single end-of-tile interleave: head-outer (h, j) -> head-inner (j, h),
    # i.e. output channel c = j * n_heads + h ('bs h n d -> bs n (d h)').
    out = jnp.stack(outs, axis=-1).reshape(tq, E)
    o_ref[0] = out.astype(o_ref.dtype)


# ----------------------------------------------------------------------------
# Wrapper
# ----------------------------------------------------------------------------
def _largest_divisor_leq(n, cap):
    t = max(1, min(n, cap))
    while n % t:
        t -= 1
    return t


def cross_attention_forward(x, y, wq, wkv, n_heads, *, q_block=512):
    """
    x:   (bs, n_q, E)   query-side input
    y:   (bs, n_kv, E)  context input
    wq:  (E, E)         q_linear.weight  (PyTorch: out_features x in_features)
    wkv: (2E, E)        kv_linear.weight
    """
    bs, n_q, E = x.shape
    _, n_kv, E2 = y.shape
    assert E2 == E and E % n_heads == 0
    d = E // n_heads

    def head_outer(w):
        # weight rows are output channels: c = j*n_heads + h  ->  h*d + j
        return w.reshape(d, n_heads, E).transpose(1, 0, 2).reshape(E, E)

    scale = 1.0 / math.sqrt(d)
    # bf16 MXU operands (f32 accumulation in-kernel). Scale folded into wq.
    wq_p = (head_outer(wq) * scale).astype(jnp.bfloat16)
    wk_p = head_outer(wkv[:E]).astype(jnp.bfloat16)
    wv_p = head_outer(wkv[E:]).astype(jnp.bfloat16)
    x_bf = x.astype(jnp.bfloat16)
    y_bf = y.astype(jnp.bfloat16)

    # Query tiling: largest divisor of n_q that fits the tile budget.
    # TODO(synk): if n_q has no good divisor (e.g. prime), pad n_q to a
    # multiple of q_block and mask the tail tile instead.
    tq = _largest_divisor_leq(n_q, q_block)
    n_qt = n_q // tq
    grid = (bs, n_qt)

    # K/V are cached in scratch across q-tiles of a batch, so the q-tile axis
    # must be sequential ("arbitrary") when there is more than one tile.
    # TODO(synk): if bs == 1 on a 2-TC chip (v7x), prefer both axes "parallel"
    # (accept KV recompute) or shard n_kv across cores.
    dim_sem = ("parallel", "arbitrary") if n_qt > 1 else ("parallel", "parallel")

    # VMEM budget from actual tile sizes (+ per-head score/prob working set),
    # clamped to v7x's 64 MiB physical VMEM.
    est = (2 * tq * E * 2            # x block, double-buffered, bf16
           + 2 * n_kv * E * 2        # y block, double-buffered, bf16
           + 3 * E * E * 2           # weights, Buffered(1), bf16
           + 2 * tq * E * 4          # out block, double-buffered, f32
           + 2 * n_kv * E * 2        # K/V scratch, bf16
           + 4 * tq * n_kv * 4)      # score/prob working set slack
    vmem_limit = int(min(max(2 * est, 8 << 20), 64 << 20))

    kernel = functools.partial(_fused_cross_attn_kernel, n_heads=n_heads)

    def weight_spec():
        # Constant index map: fetched once, single-buffered to save VMEM.
        return pl.BlockSpec((E, E), lambda b, qi: (0, 0),
                            pipeline_mode=pl.Buffered(1))

    # TODO(synk): for long n_kv / large E, stream y in KV tiles with an online
    # (flash-style) softmax instead of holding the full (n_kv, E) K/V resident.
    # TODO(synk): for production, keep E a multiple of 128 (lane-dense stores).
    return pl.pallas_call(
        kernel,
        out_shape=jax.ShapeDtypeStruct((bs, n_q, E), jnp.float32),
        grid_spec=pltpu.PrefetchScalarGridSpec(
            num_scalar_prefetch=0,
            grid=grid,
            in_specs=[
                pl.BlockSpec((1, tq, E), lambda b, qi: (b, qi, 0)),    # x
                pl.BlockSpec((1, n_kv, E), lambda b, qi: (b, 0, 0)),   # y
                weight_spec(),                                         # wq_p
                weight_spec(),                                         # wk_p
                weight_spec(),                                         # wv_p
            ],
            out_specs=pl.BlockSpec((1, tq, E), lambda b, qi: (b, qi, 0)),
            scratch_shapes=[
                pltpu.VMEM((n_kv, E), jnp.bfloat16),   # K, head-outer
                pltpu.VMEM((n_kv, E), jnp.bfloat16),   # V, head-outer
            ],
        ),
        compiler_params=pltpu.CompilerParams(
            dimension_semantics=dim_sem,
            vmem_limit_bytes=vmem_limit,
        ),
    )(x_bf, y_bf, wq_p, wk_p, wv_p)


# ----------------------------------------------------------------------------
# Pure-JAX reference for validation (matches the PyTorch module in f32)
# ----------------------------------------------------------------------------
def reference_forward(x, y, wq, wkv, n_heads):
    bs, n_q, E = x.shape
    _, n_kv, _ = y.shape
    d = E // n_heads
    q = x @ wq.T
    kvm = y @ wkv.T
    k, v = kvm[..., :E], kvm[..., E:]

    def split(t, n):
        # 'bs n (d h) -> bs h n d'  (h is the inner factor of the channel dim)
        return jnp.transpose(t.reshape(bs, n, d, n_heads), (0, 3, 1, 2))

    qh, kh, vh = split(q, n_q), split(k, n_kv), split(v, n_kv)
    s = jnp.einsum("bhqd,bhkd->bhqk", qh, kh) / math.sqrt(d)
    p = jax.nn.softmax(s, axis=-1)
    o = jnp.einsum("bhqk,bhkd->bhqd", p, vh)
    # 'bs h n d -> bs n (d h)'
    return jnp.transpose(o, (0, 2, 3, 1)).reshape(bs, n_q, E)


if __name__ == "__main__":
    bs, n_q, n_kv, E, n_heads = 2, 8, 16, 32, 4

    key = jax.random.PRNGKey(0)
    kx, ky, kwq, kwkv = jax.random.split(key, 4)

    x = jax.random.normal(kx, (bs, n_q, E), dtype=jnp.float32)
    y = jax.random.normal(ky, (bs, n_kv, E), dtype=jnp.float32)

    # nn.Linear-style init (uniform in [-1/sqrt(fan_in), 1/sqrt(fan_in)]).
    bound = 1.0 / math.sqrt(E)
    wq = jax.random.uniform(kwq, (E, E), jnp.float32, -bound, bound)        # q_linear.weight
    wkv = jax.random.uniform(kwkv, (2 * E, E), jnp.float32, -bound, bound)  # kv_linear.weight

    out = cross_attention_forward(x, y, wq, wkv, n_heads)
    out = jax.block_until_ready(out)

    ref = reference_forward(x, y, wq, wkv, n_heads)
    assert out.shape == (bs, n_q, E)
    # Tolerance reflects bf16 MXU operands (f32 accumulation); the softmax
    # reciprocal is now exact.
    assert jnp.allclose(out, ref, atol=3e-2, rtol=3e-2), "mismatch vs reference"

    print("KERNEL_OK")
</pallas_src>

<mosaic_0001>
module attributes {stable_mosaic.version = 11 : i64} {
  func.func @_fused_cross_attn_kernel(%arg0: i32, %arg1: i32, %arg2: memref<1x8x32xbf16, #tpu.memory_space<vmem>>, %arg3: memref<1x16x32xbf16, #tpu.memory_space<vmem>>, %arg4: memref<32x32xbf16, #tpu.memory_space<vmem>>, %arg5: memref<32x32xbf16, #tpu.memory_space<vmem>>, %arg6: memref<32x32xbf16, #tpu.memory_space<vmem>>, %arg7: memref<1x8x32xf32, #tpu.memory_space<vmem>>, %arg8: memref<16x32xbf16, #tpu.memory_space<vmem>>, %arg9: memref<16x32xbf16, #tpu.memory_space<vmem>>) attributes {dimension_semantics = [#tpu.dimension_semantics<parallel>, #tpu.dimension_semantics<parallel>], iteration_bounds = array<i64: 2, 1>, scalar_prefetch = 0 : i64, scratch_operands = 2 : i64, tpu.core_type = #tpu.core_type<tc>, window_params = [{transform_indices = @transform_0, window_bounds = array<i64: 1, 8, 32>}, {transform_indices = @transform_1, window_bounds = array<i64: 1, 16, 32>}, {pipeline_mode = #tpu.pipeline_mode<synchronous>, transform_indices = @transform_2, window_bounds = array<i64: 32, 32>}, {pipeline_mode = #tpu.pipeline_mode<synchronous>, transform_indices = @transform_3, window_bounds = array<i64: 32, 32>}, {pipeline_mode = #tpu.pipeline_mode<synchronous>, transform_indices = @transform_4, window_bounds = array<i64: 32, 32>}, {transform_indices = @transform_5, window_bounds = array<i64: 1, 8, 32>}]} {
    %c0_i32 = arith.constant 0 : i32
    %0 = arith.cmpi eq, %arg1, %c0_i32 : i32
    %1 = arith.extui %0 : i1 to i32
    %c0_i32_0 = arith.constant 0 : i32
    %2 = arith.cmpi ne, %1, %c0_i32_0 : i32
    scf.if %2 {
      %c0_28 = arith.constant 0 : index
      %c0_29 = arith.constant 0 : index
      %c0_30 = arith.constant 0 : index
      %79 = vector.load %arg3[%c0_28, %c0_29, %c0_30] : memref<1x16x32xbf16, #tpu.memory_space<vmem>>, vector<1x16x32xbf16>
      %80 = vector.shape_cast %79 : vector<1x16x32xbf16> to vector<16x32xbf16>
      %c0_31 = arith.constant 0 : index
      %c0_32 = arith.constant 0 : index
      %81 = vector.load %arg5[%c0_31, %c0_32] : memref<32x32xbf16, #tpu.memory_space<vmem>>, vector<32x32xbf16>
      %cst_33 = arith.constant dense<0.000000e+00> : vector<16x32xf32>
      %82 = tpu.matmul %80, %81, %cst_33 {dimension_numbers = #tpu.dot_dimension_numbers<[1], [1], [0], [0], [0, 0, 1, 0], [], []>} : vector<16x32xbf16>, vector<32x32xbf16>, vector<16x32xf32> -> vector<16x32xf32>
      %c0_34 = arith.constant 0 : index
      %c0_35 = arith.constant 0 : index
      %83 = vector.load %arg6[%c0_34, %c0_35] : memref<32x32xbf16, #tpu.memory_space<vmem>>, vector<32x32xbf16>
      %cst_36 = arith.constant dense<0.000000e+00> : vector<16x32xf32>
      %84 = tpu.matmul %80, %83, %cst_36 {dimension_numbers = #tpu.dot_dimension_numbers<[1], [1], [0], [0], [0, 0, 1, 0], [], []>} : vector<16x32xbf16>, vector<32x32xbf16>, vector<16x32xf32> -> vector<16x32xf32>
      %85 = arith.truncf %82 : vector<16x32xf32> to vector<16x32xbf16>
      %c0_37 = arith.constant 0 : index
      %c0_38 = arith.constant 0 : index
      %86 = vector.load %arg8[%c0_37, %c0_38] : memref<16x32xbf16, #tpu.memory_space<vmem>>, vector<16x32xbf16>
      tpu.vector_store %arg8[%c0_37, %c0_38], %85 {strides = array<i32>} : memref<16x32xbf16, #tpu.memory_space<vmem>>, vector<16x32xbf16>,
      %87 = arith.truncf %84 : vector<16x32xf32> to vector<16x32xbf16>
      %c0_39 = arith.constant 0 : index
      %c0_40 = arith.constant 0 : index
      %88 = vector.load %arg9[%c0_39, %c0_40] : memref<16x32xbf16, #tpu.memory_space<vmem>>, vector<16x32xbf16>
      tpu.vector_store %arg9[%c0_39, %c0_40], %87 {strides = array<i32>} : memref<16x32xbf16, #tpu.memory_space<vmem>>, vector<16x32xbf16>,
    } else {
    }
    %c0 = arith.constant 0 : index
    %c0_1 = arith.constant 0 : index
    %c0_2 = arith.constant 0 : index
    %3 = vector.load %arg2[%c0, %c0_1, %c0_2] : memref<1x8x32xbf16, #tpu.memory_space<vmem>>, vector<1x8x32xbf16>
    %4 = vector.shape_cast %3 : vector<1x8x32xbf16> to vector<8x32xbf16>
    %c0_3 = arith.constant 0 : index
    %c0_4 = arith.constant 0 : index
    %5 = vector.load %arg4[%c0_3, %c0_4] : memref<32x32xbf16, #tpu.memory_space<vmem>>, vector<32x32xbf16>
    %cst = arith.constant dense<0.000000e+00> : vector<8x32xf32>
    %6 = tpu.matmul %4, %5, %cst {dimension_numbers = #tpu.dot_dimension_numbers<[1], [1], [0], [0], [0, 0, 1, 0], [], []>} : vector<8x32xbf16>, vector<32x32xbf16>, vector<8x32xf32> -> vector<8x32xf32>
    %7 = arith.truncf %6 : vector<8x32xf32> to vector<8x32xbf16>
    %c0_5 = arith.constant 0 : index
    %c0_6 = arith.constant 0 : index
    %8 = vector.load %arg8[%c0_5, %c0_6] : memref<16x32xbf16, #tpu.memory_space<vmem>>, vector<16x32xbf16>
    %c0_7 = arith.constant 0 : index
    %c0_8 = arith.constant 0 : index
    %9 = vector.load %arg9[%c0_7, %c0_8] : memref<16x32xbf16, #tpu.memory_space<vmem>>, vector<16x32xbf16>
    %10 = vector.extract_strided_slice %7 {offsets = [0, 0], sizes = [8, 8], strides = [1, 1]} : vector<8x32xbf16> to vector<8x8xbf16>
    %11 = vector.extract_strided_slice %8 {offsets = [0, 0], sizes = [16, 8], strides = [1, 1]} : vector<16x32xbf16> to vector<16x8xbf16>
    %12 = vector.extract_strided_slice %9 {offsets = [0, 0], sizes = [16, 8], strides = [1, 1]} : vector<16x32xbf16> to vector<16x8xbf16>
    %cst_9 = arith.constant dense<0.000000e+00> : vector<8x16xf32>
    %13 = tpu.matmul %10, %11, %cst_9 {dimension_numbers = #tpu.dot_dimension_numbers<[1], [1], [0], [0], [0, 0, 1, 0], [], []>} : vector<8x8xbf16>, vector<16x8xbf16>, vector<8x16xf32> -> vector<8x16xf32>
    %cst_10 = arith.constant dense<0xFF800000> : vector<8xf32>
    %14 = vector.multi_reduction <maximumf>, %13, %cst_10 [1] : vector<8x16xf32> to vector<8xf32>
    %15 = vector.shape_cast %14 : vector<8xf32> to vector<8x1xf32>
    %16 = vector.broadcast %15 : vector<8x1xf32> to vector<8x16xf32>
    %17 = arith.subf %13, %16 : vector<8x16xf32>
    %18 = math.exp %17 : vector<8x16xf32>
    %cst_11 = arith.constant dense<0.000000e+00> : vector<8xf32>
    %19 = vector.multi_reduction <add>, %18, %cst_11 [1] : vector<8x16xf32> to vector<8xf32>
    %20 = vector.shape_cast %19 : vector<8xf32> to vector<8x1xf32>
    %21 = arith.truncf %18 : vector<8x16xf32> to vector<8x16xbf16>
    %cst_12 = arith.constant dense<0.000000e+00> : vector<8x8xf32>
    %22 = tpu.matmul %21, %12, %cst_12 {dimension_numbers = #tpu.dot_dimension_numbers<[1], [0], [0], [1], [0, 0, 1, 1], [], []>} : vector<8x16xbf16>, vector<16x8xbf16>, vector<8x8xf32> -> vector<8x8xf32>
    %23 = vector.broadcast %20 : vector<8x1xf32> to vector<8x8xf32>
    %24 = arith.divf %22, %23 : vector<8x8xf32>
    %25 = vector.extract_strided_slice %7 {offsets = [0, 8], sizes = [8, 8], strides = [1, 1]} : vector<8x32xbf16> to vector<8x8xbf16>
    %26 = vector.extract_strided_slice %8 {offsets = [0, 8], sizes = [16, 8], strides = [1, 1]} : vector<16x32xbf16> to vector<16x8xbf16>
    %27 = vector.extract_strided_slice %9 {offsets = [0, 8], sizes = [16, 8], strides = [1, 1]} : vector<16x32xbf16> to vector<16x8xbf16>
    %cst_13 = arith.constant dense<0.000000e+00> : vector<8x16xf32>
    %28 = tpu.matmul %25, %26, %cst_13 {dimension_numbers = #tpu.dot_dimension_numbers<[1], [1], [0], [0], [0, 0, 1, 0], [], []>} : vector<8x8xbf16>, vector<16x8xbf16>, vector<8x16xf32> -> vector<8x16xf32>
    %cst_14 = arith.constant dense<0xFF800000> : vector<8xf32>
    %29 = vector.multi_reduction <maximumf>, %28, %cst_14 [1] : vector<8x16xf32> to vector<8xf32>
    %30 = vector.shape_cast %29 : vector<8xf32> to vector<8x1xf32>
    %31 = vector.broadcast %30 : vector<8x1xf32> to vector<8x16xf32>
    %32 = arith.subf %28, %31 : vector<8x16xf32>
    %33 = math.exp %32 : vector<8x16xf32>
    %cst_15 = arith.constant dense<0.000000e+00> : vector<8xf32>
    %34 = vector.multi_reduction <add>, %33, %cst_15 [1] : vector<8x16xf32> to vector<8xf32>
    %35 = vector.shape_cast %34 : vector<8xf32> to vector<8x1xf32>
    %36 = arith.truncf %33 : vector<8x16xf32> to vector<8x16xbf16>
    %cst_16 = arith.constant dense<0.000000e+00> : vector<8x8xf32>
    %37 = tpu.matmul %36, %27, %cst_16 {dimension_numbers = #tpu.dot_dimension_numbers<[1], [0], [0], [1], [0, 0, 1, 1], [], []>} : vector<8x16xbf16>, vector<16x8xbf16>, vector<8x8xf32> -> vector<8x8xf32>
    %38 = vector.broadcast %35 : vector<8x1xf32> to vector<8x8xf32>
    %39 = arith.divf %37, %38 : vector<8x8xf32>
    %40 = vector.extract_strided_slice %7 {offsets = [0, 16], sizes = [8, 8], strides = [1, 1]} : vector<8x32xbf16> to vector<8x8xbf16>
    %41 = vector.extract_strided_slice %8 {offsets = [0, 16], sizes = [16, 8], strides = [1, 1]} : vector<16x32xbf16> to vector<16x8xbf16>
    %42 = vector.extract_strided_slice %9 {offsets = [0, 16], sizes = [16, 8], strides = [1, 1]} : vector<16x32xbf16> to vector<16x8xbf16>
    %cst_17 = arith.constant dense<0.000000e+00> : vector<8x16xf32>
    %43 = tpu.matmul %40, %41, %cst_17 {dimension_numbers = #tpu.dot_dimension_numbers<[1], [1], [0], [0], [0, 0, 1, 0], [], []>} : vector<8x8xbf16>, vector<16x8xbf16>, vector<8x16xf32> -> vector<8x16xf32>
    %cst_18 = arith.constant dense<0xFF800000> : vector<8xf32>
    %44 = vector.multi_reduction <maximumf>, %43, %cst_18 [1] : vector<8x16xf32> to vector<8xf32>
    %45 = vector.shape_cast %44 : vector<8xf32> to vector<8x1xf32>
    %46 = vector.broadcast %45 : vector<8x1xf32> to vector<8x16xf32>
    %47 = arith.subf %43, %46 : vector<8x16xf32>
    %48 = math.exp %47 : vector<8x16xf32>
    %cst_19 = arith.constant dense<0.000000e+00> : vector<8xf32>
    %49 = vector.multi_reduction <add>, %48, %cst_19 [1] : vector<8x16xf32> to vector<8xf32>
    %50 = vector.shape_cast %49 : vector<8xf32> to vector<8x1xf32>
    %51 = arith.truncf %48 : vector<8x16xf32> to vector<8x16xbf16>
    %cst_20 = arith.constant dense<0.000000e+00> : vector<8x8xf32>
    %52 = tpu.matmul %51, %42, %cst_20 {dimension_numbers = #tpu.dot_dimension_numbers<[1], [0], [0], [1], [0, 0, 1, 1], [], []>} : vector<8x16xbf16>, vector<16x8xbf16>, vector<8x8xf32> -> vector<8x8xf32>
    %53 = vector.broadcast %50 : vector<8x1xf32> to vector<8x8xf32>
    %54 = arith.divf %52, %53 : vector<8x8xf32>
    %55 = vector.extract_strided_slice %7 {offsets = [0, 24], sizes = [8, 8], strides = [1, 1]} : vector<8x32xbf16> to vector<8x8xbf16>
    %56 = vector.extract_strided_slice %8 {offsets = [0, 24], sizes = [16, 8], strides = [1, 1]} : vector<16x32xbf16> to vector<16x8xbf16>
    %57 = vector.extract_strided_slice %9 {offsets = [0, 24], sizes = [16, 8], strides = [1, 1]} : vector<16x32xbf16> to vector<16x8xbf16>
    %cst_21 = arith.constant dense<0.000000e+00> : vector<8x16xf32>
    %58 = tpu.matmul %55, %56, %cst_21 {dimension_numbers = #tpu.dot_dimension_numbers<[1], [1], [0], [0], [0, 0, 1, 0], [], []>} : vector<8x8xbf16>, vector<16x8xbf16>, vector<8x16xf32> -> vector<8x16xf32>
    %cst_22 = arith.constant dense<0xFF800000> : vector<8xf32>
    %59 = vector.multi_reduction <maximumf>, %58, %cst_22 [1] : vector<8x16xf32> to vector<8xf32>
    %60 = vector.shape_cast %59 : vector<8xf32> to vector<8x1xf32>
    %61 = vector.broadcast %60 : vector<8x1xf32> to vector<8x16xf32>
    %62 = arith.subf %58, %61 : vector<8x16xf32>
    %63 = math.exp %62 : vector<8x16xf32>
    %cst_23 = arith.constant dense<0.000000e+00> : vector<8xf32>
    %64 = vector.multi_reduction <add>, %63, %cst_23 [1] : vector<8x16xf32> to vector<8xf32>
    %65 = vector.shape_cast %64 : vector<8xf32> to vector<8x1xf32>
    %66 = arith.truncf %63 : vector<8x16xf32> to vector<8x16xbf16>
    %cst_24 = arith.constant dense<0.000000e+00> : vector<8x8xf32>
    %67 = tpu.matmul %66, %57, %cst_24 {dimension_numbers = #tpu.dot_dimension_numbers<[1], [0], [0], [1], [0, 0, 1, 1], [], []>} : vector<8x16xbf16>, vector<16x8xbf16>, vector<8x8xf32> -> vector<8x8xf32>
    %68 = vector.broadcast %65 : vector<8x1xf32> to vector<8x8xf32>
    %69 = arith.divf %67, %68 : vector<8x8xf32>
    %70 = vector.shape_cast %24 : vector<8x8xf32> to vector<8x8x1xf32>
    %71 = vector.shape_cast %39 : vector<8x8xf32> to vector<8x8x1xf32>
    %72 = vector.shape_cast %54 : vector<8x8xf32> to vector<8x8x1xf32>
    %73 = vector.shape_cast %69 : vector<8x8xf32> to vector<8x8x1xf32>
    %74 = tpu.concatenate %70, %71, %72, %73 in 2 : vector<8x8x1xf32>, vector<8x8x1xf32>, vector<8x8x1xf32>, vector<8x8x1xf32> -> vector<8x8x4xf32>
    %75 = vector.shape_cast %74 : vector<8x8x4xf32> to vector<8x32xf32>
    %c0_25 = arith.constant 0 : index
    %c0_26 = arith.constant 0 : index
    %c0_27 = arith.constant 0 : index
    %76 = vector.load %arg7[%c0_25, %c0_26, %c0_27] : memref<1x8x32xf32, #tpu.memory_space<vmem>>, vector<1x8x32xf32>
    %77 = vector.shape_cast %76 : vector<1x8x32xf32> to vector<8x32xf32>
    %78 = vector.shape_cast %75 : vector<8x32xf32> to vector<1x8x32xf32>
    tpu.vector_store %arg7[%c0_25, %c0_26, %c0_27], %78 {strides = array<i32>} : memref<1x8x32xf32, #tpu.memory_space<vmem>>, vector<1x8x32xf32>,
    return
  }
  func.func @transform_0(%arg0: i32, %arg1: i32) -> (i32, i32, i32) {
    %c0_i32 = arith.constant 0 : i32
    %c0_i32_0 = arith.constant 0 : i32
    return %arg0, %arg1, %c0_i32 : i32, i32, i32
  }
  func.func @transform_1(%arg0: i32, %arg1: i32) -> (i32, i32, i32) {
    %c0_i32 = arith.constant 0 : i32
    %c0_i32_0 = arith.constant 0 : i32
    %c0_i32_1 = arith.constant 0 : i32
    return %arg0, %c0_i32, %c0_i32_0 : i32, i32, i32
  }
  func.func @transform_2(%arg0: i32, %arg1: i32) -> (i32, i32) {
    %c0_i32 = arith.constant 0 : i32
    %c0_i32_0 = arith.constant 0 : i32
    %c0_i32_1 = arith.constant 0 : i32
    return %c0_i32, %c0_i32_0 : i32, i32
  }
  func.func @transform_3(%arg0: i32, %arg1: i32) -> (i32, i32) {
    %c0_i32 = arith.constant 0 : i32
    %c0_i32_0 = arith.constant 0 : i32
    %c0_i32_1 = arith.constant 0 : i32
    return %c0_i32, %c0_i32_0 : i32, i32
  }
  func.func @transform_4(%arg0: i32, %arg1: i32) -> (i32, i32) {
    %c0_i32 = arith.constant 0 : i32
    %c0_i32_0 = arith.constant 0 : i32
    %c0_i32_1 = arith.constant 0 : i32
    return %c0_i32, %c0_i32_0 : i32, i32
  }
  func.func @transform_5(%arg0: i32, %arg1: i32) -> (i32, i32, i32) {
    %c0_i32 = arith.constant 0 : i32
    %c0_i32_0 = arith.constant 0 : i32
    return %arg0, %arg1, %c0_i32 : i32, i32, i32
  }
}

</mosaic_0001>

<bundles_post_ra>
// kernel: tpu_custom_call.1
= control target key start
LH: loop header
LB: loop body
LE: loop exit
PB: predicated region body
PF: predicated region fallthrough
CT: control target
= control target key end

     0   :  { %s2625_s0 = inlined_call_operand.hbm [shape: bf16[2,8,32], index: 0, kind: input, shape index: {}]   ;;  %s2626_s1 = inlined_call_operand.hbm [shape: bf16[2,16,32], index: 1, kind: input, shape index: {}]   ;;  %s2627_s2 = inlined_call_operand.hbm [shape: bf16[32,32], index: 2, kind: input, shape index: {}]   ;;  %s2628_s3 = inlined_call_operand.hbm [shape: bf16[32,32], index: 3, kind: input, shape index: {}]   ;;  %s2629_s4 = inlined_call_operand.hbm [shape: bf16[32,32], index: 4, kind: input, shape index: {}]   ;;  %s2630_s5 = inlined_call_operand.hbm [shape: f32[2,8,32], index: 5, kind: output, shape index: {}]  }
   0x1   :  { %2637 = sst [smem:[#allocation20_spill]] %s2625_s0 }
   0x2   :  { %2638 = sst [smem:[#allocation21_spill]] %s2627_s2 }
   0x3   :  { %10 = vsyncpa [#allocation5], 0 }
   0x4   :  { %12 = vsyncpa [#allocation5 + $0x1], 0 }
   0x5   :  { %13 = vsyncpa [#allocation8], 0 }
   0x6   :  { %15 = vsyncpa [#allocation8 + $0x1], 0 }
   0x7   :  { %16 = vsyncpa [#allocation11], 0 }
   0x8   :  { %17 = vsyncpa [#allocation6], 0 }
   0x9   :  { %19 = vsyncpa [#allocation6 + $0x1], 0  ;;  %s2122_s18 = smov 0   ;;  %s2124_s19 = smov 0  }
   0xa   :  { %s2126_s20 = smov 0   ;;  %s2128_s21 = smov 0  }
   0xb   :  { %s2130_s22 = smov 0   ;;  %s2132_s23 = smov 0  }
   0xc LB: > { %s2153_s24 = sadd.s32 4294967295, %s2068_s23   ;;  %s1555_s25 = sadd.s32 4294967294, %s2068_s23   ;;  %s2068_s23 = sphi %s2132_s23, %s25_s23   ;;  %s2064_s22 = sphi %s2130_s22, %s2666_s22   ;;  %s2060_s21 = sphi %s2128_s21, %s2665_s21   ;;  %s2056_s20 = sphi %s2126_s20, %s2664_s20   ;;  %s2052_s19 = sphi %s2124_s19, %s2663_s19   ;;  %s2048_s18 = sphi %s2122_s18, %s2662_s18  }
   0xd   : > { %p59_p0 = scmp.ne.s32.totalorder %s2052_s19, %s2048_s18  ;;  %p2631_p1 = scmp.eq.s32.totalorder %s2153_s24, 0 }
   0xe   : > { %p180_p3 = scmp.eq.s32.totalorder %s1555_s25, 1  ;;  %p1556_p5 = scmp.ge.s32.totalorder %s2068_s23, 1 }
   0xf   : > { %p2162_p4 = por %p2631_p1, %p59_p0  ;;  %p187_p7 = scmp.lt.s32.totalorder %s2068_s23, 3 }
  0x10   : > { %p2167_p6 = por %p180_p3, %p59_p0  ;;  %s2070_s29 = smov [#allocation9]  }
  0x11   : > { %s2639_s26 = scalar_select %p2162_p4, 1, 0 }
  0x12   : > { %s2640_s27 = scalar_select %p2167_p6, 1, 0 }
  0x13   : > { %p2172_p8 = pnand %p1556_p5, %p187_p7  ;;  %s199_s30 = sshll.u32 %s2070_s29, 4  ;;  %s2176_s30 = int_to_ptr.vmem [resolvable:$true] %s199_s30 }
  0x14   : > { %2641 = sst [smem:[#allocation19_spill]] %s2640_s27  ;;  %s2071_s7 = smov [#allocation10]  }
  0x15   : > { %s2642_s28 = scalar_select %p2172_p8, 1, 0 }
  0x16   : > { %p1711_p9 = pneg %p2172_p8  ;;  %s212_s8 = sshll.u32 %s2071_s7, 4  ;;  %s2187_s8 = int_to_ptr.vmem [resolvable:$true] %s212_s8 }
  0x17   : > { %s2072_s9 = smov [#allocation12]   ;;  %s2644_s2 = sld [smem:[#allocation21_spill]] }
  0x18   : > { %p2183_p11 = pnand %p1711_p9, %p2631_p1  ;;  %s2189_s10 = sshll.u32 %s2072_s9, 4  ;;  %s226_s10 = int_to_ptr.vmem [resolvable:$true] %s2189_s10 }
  0x1a   : > { %p2199_p13 = pneg %p2183_p11 }
  0x1d   : > { %s1830_s13 = scalar_lea.hbm %s2644_s2, 256 }
  0x1e   : > { %p1831_p12 = scmp.ne.s32.totalorder %s2644_s2, %s1830_s13  ;;  %p1837_p5 = scmp.lt.u32.totalorder %s1830_s13, %s2644_s2 }
  0x20   : > { %p1833_p0 = pnand %p2199_p13, %p1831_p12 }
  0x22   : > { %p1834_p3 = pneg %p1833_p0 }
  0x24   : > { %p1839_p7 = pnand %p1837_p5, %p1834_p3 }
  0x26   : > { %1842 = shalt.err (!%p1839_p7)
}
  0x27   : > { %s1843_s29 = scalar_lea.vmem %s2176_s30, 256  ;;  %p1851_p2 = scmp.lt.s32.totalorder %s2176_s30, %s2176_s30 }
  0x28   : > { %p1844_p9 = scmp.ne.s32.totalorder %s2176_s30, %s1843_s29  ;;  %p1852_p6 = scmp.lt.s32.totalorder %s1843_s29, %s1843_s29 }
  0x2a   : > { %p1846_p10 = pnand %p1844_p9, %p2199_p13  ;;  %p1853_p12 = por %p1852_p6, %p1851_p2 }
  0x2c   : > { %p1847_p1 = pneg %p1846_p10 }
  0x2e   : > { %p1854_p0 = pnand %p1853_p12, %p1847_p1 }
  0x30   : > { %1857 = shalt.err (!%p1854_p0)
}
  0x31   : > { %s2635_s7 = smov 64   ;;  %s2636_s9 = smov 4  }
  0x32   : > { %1714 = dma.hbm_to_vmem [thread:$0]  (!%p2183_p11), %s2644_s2, 256, %s2176_s30, [#allocation8], %s2635_s7, %s2635_s7, %s2636_s9  }
  0x33   : > { %s1858_s15 = scalar_lea.hbm %s2628_s3, 256 }
  0x34   : > { %p1859_p1 = scmp.ne.s32.totalorder %s2628_s3, %s1858_s15  ;;  %p1865_p10 = scmp.lt.u32.totalorder %s1858_s15, %s2628_s3 }
  0x36   : > { %p1861_p2 = pnand %p1859_p1, %p2199_p13 }
  0x38   : > { %p1862_p6 = pneg %p1861_p2 }
  0x3a   : > { %p1867_p3 = pnand %p1865_p10, %p1862_p6 }
  0x3c   : > { %1870 = shalt.err (!%p1867_p3)
}
  0x3d   : > { %s1871_s30 = scalar_lea.vmem %s2187_s8, 256  ;;  %p1879_p12 = scmp.lt.s32.totalorder %s2187_s8, %s2187_s8 }
  0x3e   : > { %p1872_p5 = scmp.ne.s32.totalorder %s2187_s8, %s1871_s30  ;;  %p1880_p0 = scmp.lt.s32.totalorder %s1871_s30, %s1871_s30 }
  0x40   : > { %p1874_p7 = pnand %p1872_p5, %p2199_p13  ;;  %p1881_p1 = por %p1880_p0, %p1879_p12 }
  0x42   : > { %p1875_p9 = pneg %p1874_p7 }
  0x44   : > { %p1882_p2 = pnand %p1881_p1, %p1875_p9 }
  0x46   : > { %1885 = shalt.err (!%p1882_p2)
}
  0x47   : > { %1717 = dma.hbm_to_vmem [thread:$0]  (!%p2183_p11), %s2628_s3, 256, %s2187_s8, [#allocation11], %s2635_s7, %s2635_s7, %s2636_s9  }
  0x48   : > { %s1886_s14 = scalar_lea.hbm %s2629_s4, 256 }
  0x49   : > { %p1887_p6 = scmp.ne.s32.totalorder %s2629_s4, %s1886_s14  ;;  %p1893_p5 = scmp.lt.u32.totalorder %s1886_s14, %s2629_s4 }
  0x4b   : > { %p1889_p10 = pnand %p1887_p6, %p2199_p13 }
  0x4d   : > { %p1890_p3 = pneg %p1889_p10 }
  0x4f   : > { %p1895_p7 = pnand %p1893_p5, %p1890_p3 }
  0x51   : > { %1898 = shalt.err (!%p1895_p7)
}
  0x52   : > { %s1899_s30 = scalar_lea.vmem %s226_s10, 256  ;;  %p1907_p1 = scmp.lt.s32.totalorder %s226_s10, %s226_s10 }
  0x53   : > { %p1900_p9 = scmp.ne.s32.totalorder %s226_s10, %s1899_s30  ;;  %p1908_p2 = scmp.lt.s32.totalorder %s1899_s30, %s1899_s30 }
  0x55   : > { %p1902_p12 = pnand %p1900_p9, %p2199_p13  ;;  %p1909_p4 = por %p1908_p2, %p1907_p1 }
  0x57   : > { %p1903_p0 = pneg %p1902_p12 }
  0x59   : > { %p1910_p8 = pnand %p1909_p4, %p1903_p0 }
  0x5b   : > { %1913 = shalt.err (!%p1910_p8)
}
  0x5c   : > { %1720 = dma.hbm_to_vmem [thread:$0]  (!%p2183_p11), %s2629_s4, 256, %s226_s10, [#allocation11], %s2635_s7, %s2635_s7, %s2636_s9  }
  0x5d   : > { %s46_s16 = sadd.s32 1, %s2056_s20  ;;  %s37_s6 = sadd.s32 1, %s2064_s22 }
  0x5e   : > { %p53_p4 = scmp.ne.s32.totalorder %s2056_s20, %s2052_s19  ;;  %p39_p8 = scmp.ge.s32.totalorder %s37_s6, 2 }
  0x5f   : > { %p54_p13 = scmp.eq.s32.totalorder %s2068_s23, 0  ;;  %p2646_p6 = scmp.eq.s32.totalorder %s2153_s24, 1 }
  0x60   : > { %p1735_p3 = scmp.lt.s32.totalorder %s2068_s23, 2  ;;  %s2668_s6 = smov (%p39_p8, %s37_s6), 0 }
  0x61   : > { %p2278_p10 = por %p2646_p6, %p53_p4  ;;  %p55_p5 = por %p54_p13, %p53_p4 }
  0x62   : > { %s2286_s12 = sand.u32 1, %s2056_s20   ;;  %s41_s10 = ssub.s32 %s2064_s22, %s2668_s6 }
  0x63   : > { %p44_p11 = scmp.eq.s32.totalorder %s41_s10, 0  ;;  %s1561_s13 = sshll.u32 %s2286_s12, 2 }
  0x64   : > { %s1562_s14 = sshll.u32 %s2064_s22, 6  ;;  %s2648_s0 = sld [smem:[#allocation20_spill]] }
  0x65   : > { %s2293_s15 = scalar_select %p44_p11, %s2056_s20, %s46_s16  }
  0x66   : > { %s243_s30 = scalar_lea.vmem [#allocation4], %s1561_s13  ;;  %p2304_p7 = pnand %p1735_p3, %p55_p5 }
  0x67   : > { %s251_s8 = sshll.u32 %s243_s30, 4  ;;  %s1563_s16 = sshll.u32 %s2286_s12, 3  ;;  %s2300_s8 = int_to_ptr.vmem [resolvable:$true] %s251_s8 }
  0x68   : > { %s240_s17 = scalar_lea.sflag [#allocation5], %s2286_s12  ;;  %p1916_p12 = pneg %p2304_p7 }
  0x6a   : > { %s2298_s29 = scalar_lea.hbm %s2648_s0, %s1562_s14  ;;  %s1919_s30 = scalar_lea.hbm %s2648_s0, 128 }
  0x6b   : > { %s1914_s14 = scalar_lea.hbm %s2298_s29, 64  ;;  %p1920_p2 = scmp.lt.u32.totalorder %s2298_s29, %s2648_s0 }
  0x6c   : > { %p1915_p9 = scmp.ne.s32.totalorder %s2298_s29, %s1914_s14  ;;  %p1921_p4 = scmp.lt.u32.totalorder %s1919_s30, %s1914_s14 }
  0x6d   : > { %p1923_p13 = scmp.lt.u32.totalorder %s1914_s14, %s2298_s29 }
  0x6e   : > { %p1917_p0 = pnand %p1916_p12, %p1915_p9  ;;  %p1922_p8 = por %p1921_p4, %p1920_p2 }
  0x70   : > { %p1918_p1 = pneg %p1917_p0  ;;  %p1924_p6 = por %p1923_p13, %p1922_p8 }
  0x72   : > { %p1925_p3 = pnand %p1924_p6, %p1918_p1 }
  0x74   : > { %1928 = shalt.err (!%p1925_p3)
}
  0x75   : > { %s1929_s10 = scalar_lea.vmem %s2300_s8, 64  ;;  %s2075_s13 = smov [#allocation4]  }
  0x76   : > { %p1930_p5 = scmp.ne.s32.totalorder %s2300_s8, %s1929_s10  ;;  %s1934_s25 = sshll.u32 %s2075_s13, 4  ;;  %s1935_s25 = int_to_ptr.vmem [resolvable:$false] %s1934_s25 }
  0x77   : > { %s1936_s7 = scalar_lea.vmem %s1935_s25, 128  ;;  %p1937_p0 = scmp.lt.s32.totalorder %s2300_s8, %s1935_s25 }
  0x78   : > { %p1932_p11 = pnand %p1930_p5, %p1916_p12  ;;  %p1938_p2 = scmp.lt.s32.totalorder %s1936_s7, %s1929_s10 }
  0x7a   : > { %p1933_p9 = pneg %p1932_p11  ;;  %p1939_p4 = por %p1938_p2, %p1937_p0 }
  0x7c   : > { %p1940_p8 = pnand %p1939_p4, %p1933_p9 }
  0x7e   : > { %1943 = shalt.err (!%p1940_p8)
}
  0x7f   : > { %1724 = dma.hbm_to_vmem [thread:$0]  (!%p2304_p7), %s2298_s29, 64, %s2300_s8, %s240_s17  }
  0x80   : > { %s262_s9 = scalar_lea.vmem [#allocation7], %s1563_s16  ;;  %s258_s30 = sand.u32 1, %s2068_s23  }
  0x81   : > { %s269_s14 = sshll.u32 %s262_s9, 4  ;;  %s2650_s13 = sshll.u32 %s2064_s22, 7  ;;  %s2339_s14 = int_to_ptr.vmem [resolvable:$true] %s269_s14 }
  0x82   : > { %s2346_s7 = scalar_lea.hbm %s2626_s1, %s2650_s13  ;;  %s2348_s0 = scalar_lea.sflag [#allocation8], %s258_s30 }
  0x83   : > { %s1944_s2 = scalar_lea.hbm %s2346_s7, 128  ;;  %s1949_s8 = scalar_lea.hbm %s2626_s1, 256 }
  0x84   : > { %p1945_p1 = scmp.ne.s32.totalorder %s2346_s7, %s1944_s2  ;;  %p1950_p3 = scmp.lt.u32.totalorder %s2346_s7, %s2626_s1 }
  0x85   : > { %p1951_p5 = scmp.lt.u32.totalorder %s1949_s8, %s1944_s2  ;;  %p1953_p9 = scmp.lt.u32.totalorder %s1944_s2, %s2346_s7 }
  0x86   : > { %p1947_p13 = pnand %p1945_p1, %p1916_p12 }
  0x87   : > { %p1952_p11 = por %p1951_p5, %p1950_p3 }
  0x88   : > { %p1948_p6 = pneg %p1947_p13 }
  0x89   : > { %p1954_p0 = por %p1953_p9, %p1952_p11 }
  0x8b   : > { %p1955_p2 = pnand %p1954_p0, %p1948_p6 }
  0x8d   : > { %1958 = shalt.err (!%p1955_p2)
}
  0x8e   : > { %s1959_s9 = scalar_lea.vmem %s2339_s14, 128  ;;  %s2076_s30 = smov [#allocation7]  }
  0x8f   : > { %p1960_p4 = scmp.ne.s32.totalorder %s2339_s14, %s1959_s9  ;;  %s1964_s13 = sshll.u32 %s2076_s30, 4  ;;  %s1965_s13 = int_to_ptr.vmem [resolvable:$false] %s1964_s13 }
  0x90   : > { %s1966_s10 = scalar_lea.vmem %s1965_s13, 256  ;;  %p1967_p13 = scmp.lt.s32.totalorder %s2339_s14, %s1965_s13 }
  0x91   : > { %p1962_p8 = pnand %p1960_p4, %p1916_p12  ;;  %p1968_p3 = scmp.lt.s32.totalorder %s1966_s10, %s1959_s9 }
  0x93   : > { %p1963_p1 = pneg %p1962_p8  ;;  %p1969_p5 = por %p1968_p3, %p1967_p13 }
  0x95   : > { %p1970_p11 = pnand %p1969_p5, %p1963_p1 }
  0x97   : > { %1973 = shalt.err (!%p1970_p11)
}
  0x98   : > { %s2651_s2 = smov 4   ;;  %s2652_s25 = smov 64  }
  0x99   : > { %1727 = dma.hbm_to_vmem [thread:$0]  (!%p2304_p7), %s2346_s7, 128, %s2339_s14, %s2348_s0, %s2652_s25, %s2652_s25, %s2651_s2  }
  0x9a   : > { %p2653_p12 = scmp.ne.s32.totalorder %s2642_s28, 0 }
  0x9b   : > { %s2380_s12 = sand.u32 (!%p2653_p12), 1, %s2052_s19   ;;  %p2654_p6 = scmp.ne.s32.totalorder (!%p2653_p12), %s2639_s26, 0 }
  0x9c   : > { %281 = sbr.rel (%p2653_p12) target bundleno = 1438 (0x59e), region = 40  ;;  %s1567_s29 = sshll.u32 (!%p2653_p12), %s2380_s12, 2 }
  0x9d   : > { %s284_s8 = scalar_lea.sflag (!%p2653_p12), [#allocation5], %s2380_s12  ;;  %s2384_s16 = scalar_lea.vmem (!%p2653_p12), [#allocation4], %s1567_s29 }
  0xa3   : > { %2027 = dma.done.wait (%p2654_p6), %s284_s8, 64  }
  0xa4   : > { %2029 = vsyncadd (%p2654_p6), %s284_s8, 4294967232  ;;  %s292_s0 = sand.u32 1, %s2153_s24   ;;  %s1568_s28 = sshll.u32 %s2380_s12, 3 }
  0xa5   : > { %s293_s27 = scalar_lea.sflag [#allocation8], %s292_s0  ;;  %s296_s14 = scalar_lea.vmem [#allocation7], %s1568_s28 }
  0xa6   : > { %2031 = dma.done.wait (%p2654_p6), %s293_s27, 128  }
  0xa7   : > { %2033 = vsyncadd (%p2654_p6), %s293_s27, 4294967168  ;;  %p2655_p7 = scmp.eq.s32.totalorder %s2153_s24, 0 }
  0xa9   : > { %2035 = dma.done.wait (%p2655_p7), [#allocation8], 256   ;;  %p2656_p9 = pmov %p2655_p7 }
  0xaa   : > { %p2657_p0 = pmov %p2655_p7 }
  0xab   : > { %2037 = vsyncadd (%p2656_p9), [#allocation8], 4294967040 }
  0xac   : > { %2039 = dma.done.wait (%p2657_p0), [#allocation11], 512   ;;  %p2658_p2 = pmov %p2657_p0 }
  0xad   : > { %v2077_v0 = vmov 0.0   ;;  %vm2078_vm0 = vmmov 0   ;;  %vm366_vm1 = vcmask 261120   ;;  %v1807_v1 = vld [vmem:[#allocation10] sm:$0xff]   ;;  %v1808_v3 = vld [vmem:[#allocation10 + $0x8] sm:$0xff]   ;;  %v1812_v4 = vld [vmem:[#allocation12] sm:$0xff]  }
  0xae   : > { %2041 = vsyncadd (%p2658_p2), [#allocation11], 4294966784  ;;  %1621 = vmatprep.subr.bf16.mxu0 %v2077_v0  ;;  %1625 = vmatprep.mubr.msk.bf16.mxu0 %vm2078_vm0, %v2077_v0  ;;  %v371_v2 = vsel %vm366_vm1, %v1807_v1, 0  ;;  %v432_v5 = vsel %vm366_vm1, %v1812_v4, 0  ;;  %v374_v6 = vsel %vm366_vm1, %v1808_v3, 0  ;;  %v1810_v7 = vld [vmem:[#allocation9] sm:$0xff]  }
  0xaf   : > { %1629 = vmatprep.subr.bf16.mxu1 %v2077_v0  ;;  %1633 = vmatprep.mubr.msk.bf16.mxu1 %vm2078_vm0, %v2077_v0  ;;  %v1809_v8 = vld [vmem:[%s296_s14] sm:$0xff]   ;;  %v502_v9 = vsel %vm366_vm1, %v1810_v7, 0  ;;  %v1811_v10 = vld [vmem:[#allocation9 + $0x8] sm:$0xff]   ;;  %vm550_vm2 = vcmask 64512   ;;  %s2079_s24 = smov 112   ;;  %s2080_s26 = smov 120  }
  0xb0   : > { %1622 = vmatpush3.bf16.xpose.msra.mxu0 %v371_v2  ;;  %1630 = vmatpush3.bf16.xpose.msra.mxu1 %v432_v5  ;;  %v505_v11 = vsel %vm366_vm1, %v1811_v10, 0  ;;  %v482_v12 = vld [vmem:[%s2384_s16] sm:$0xf]  ;;  %s2081_s7 = smov 104   ;;  %vm597_vm3 = vcmask 130048   ;;  %vm1204_vm4 = vcmask 7168  }
  0xb1   : > { %1623 = vmatprep.subr.bf16.mxu0 %v2077_v0  ;;  %1631 = vmatprep.subr.bf16.mxu1 %v2077_v0  ;;  %v1813_v13 = vld [vmem:[#allocation12 + $0x8] sm:$0xff]   ;;  %vm1213_vm5 = vcmask 15360   ;;  %vm1222_vm6 = vcmask 23552   ;;  %s2084_s17 = smov 8   ;;  %s2085_s9 = smov 4   ;;  %vm1395_vm7 = vcmask 31744  }
  0xb2   : > { %v435_v14 = vsel %vm366_vm1, %v1813_v13, 0  ;;  %s2086_s30 = smov 16   ;;  %s2087_s13 = smov 12   ;;  %vm1398_vm8 = vcmask 97280   ;;  %vm1401_vm9 = vcmask 162816   ;;  %vm1403_vm10 = vcmask 195584  }
  0xb3   : > { %s2088_s10 = smov 24   ;;  %s2089_s2 = smov 20   ;;  %vm1405_vm11 = vcmask 228352  }
  0xb4   : > { %s2090_s25 = smov 28   ;;  %s1592_s29 = sshll.u32 %s2060_s21, 7 }
  0xb5   : > { %s339_s8 = scalar_lea.vmem [#allocation13], %s1568_s28  ;;  %s2575_s14 = scalar_lea.hbm %s2630_s5, %s1592_s29 }
  0xb6   : > { %s1423_s16 = sshll.u32 %s339_s8, 4  ;;  %s1409_s21 = scalar_lea.sflag [#allocation6], %s2380_s12  ;;  %s2577_s16 = int_to_ptr.vmem [resolvable:$true] %s1423_s16 }
  0xb7   : > { %s2091_s28 = smov [#allocation13]  }
  0xb8   : > { %1624 = vmatpush3.bf16.xpose.msra.mxu0 %v374_v6  ;;  %1632 = vmatpush3.bf16.xpose.msra.mxu1 %v435_v14 }
  0xb9   : > { %1637 = vmatprep.subr.bf16.mxu0 %v2077_v0  ;;  %1645 = vmatprep.subr.bf16.mxu1 %v2077_v0 }
  0xbf   : > { %1626 = vmatmul.mubr.msk.bf16.vlgmr.msra.gmra.mrb[0].mxu0 %vm366_vm1, %v1809_v8  ;;  %1634 = vmatmul.mubr.msk.bf16.vlgmr.msra.gmra.mrb[0].mxu1 %vm366_vm1, %v1809_v8 }
  0xc0   : > { %1638 = vmatpush3.bf16.xpose.msra.mxu0 %v502_v9  ;;  %1641 = vmatprep.mubr.msk.bf16.mxu0 %vm2078_vm0, %v2077_v0 }
  0xc1   : > { %1639 = vmatprep.subr.bf16.mxu0 %v2077_v0  ;;  %1647 = vmatprep.mubr.msk.bf16.mxu1 %vm2078_vm0, %v2077_v0 }
  0xc8   : > { %1640 = vmatpush3.bf16.xpose.msra.mxu0 %v505_v11 }
  0xc9   : > { %1657 = vmatprep.subr.bf16.mxu0 %v2077_v0 }
  0xcf   : > { %1642 = vmatmul.mubr.msk.bf16.vlgmr.msra.gmra.mrb[4].mxu0 %vm366_vm1, %v482_v12 }
  0xd0   : > { %1659 = vmatprep.mubr.msk.bf16.mxu0 %vm2078_vm0, %v2077_v0 }
 0x192   : > { %v410_v15 = vpop.f32.mrb[0].mxu0  ;;  %v471_v27 = vpop.f32.mrb[0].mxu1 }
 0x193   : > { %v1627_v16 = vpop.f32.mrb[1].mxu0  ;;  %v1635_v28 = vpop.f32.mrb[1].mxu1 }
 0x194   : > { %v413_v17 = vpop.f32.mrb[2].mxu0  ;;  %v474_v29 = vpop.f32.mrb[2].mxu1 }
 0x195   : > { %v478_v18 = vpack.c.bf16 %v413_v17, %v410_v15  ;;  %v1628_v19 = vpop.f32.mrb[3].mxu0  ;;  %v480_v30 = vpack.c.bf16 %v474_v29, %v471_v27  ;;  %v1636_v31 = vpop.f32.mrb[3].mxu1  ;;  %v980_v27 = vlaneseq }
 0x197   : > { %479 = vst.msk [vmem:[#allocation2] sm:$0xff] %vm366_vm1, %v478_v18  ;;  %481 = vst.msk [vmem:[#allocation3] sm:$0xff] %vm366_vm1, %v480_v30  ;;  %v2483_v28 = vshrl.u32 %v980_v27, 7 }
 0x199   : > { %v2486_v29 = vsub.s32 0, %v2483_v28  ;;  %v2489_v30 = vsub.s32 1, %v2483_v28 }
 0x19e   : > { %v548_v20 = vld [vmem:[#allocation2] sm:$0xff]  ;;  %v549_v32 = vld [vmem:[#allocation3] sm:$0xff] }
 0x19f   : > { %766 = vrot.lane.b32.xlu1 %v548_v20, %s2079_s24  ;;  %657 = vrot.lane.b32.xlu0 %v548_v20, %s2080_s26  ;;  %v555_v21 = vsel %vm550_vm2, %v548_v20, 0 }
 0x1a0   : > { %1646 = vmatpush3.bf16.xpose.msra.mxu1 %v555_v21 }
 0x1a1   : > { %1651 = vmatprep.subr.bf16.mxu1 %v2077_v0 }
 0x1a2   : > { %v541_v22 = vpop.f32.mrb[4].mxu0 }
 0x1a3   : > { %v547_v23 = vpack.c.bf16 %v541_v22, %v541_v22  ;;  %v1643_v24 = vpop.f32.mrb[5].mxu0 }
 0x1a4   : > { %v544_v25 = vpop.f32.mrb[6].mxu0 }
 0x1a5   : > { %764 = vrot.lane.b32.xlu1 %v547_v23, %s2079_s24  ;;  %654 = vrot.lane.b32.xlu0 %v547_v23, %s2080_s26  ;;  %v1644_v26 = vpop.f32.mrb[7].mxu0 }
 0x1a7   : > { %1648 = vmatmul.mubr.msk.bf16.vlgmr.msra.gmra.mrb[4].mxu1 %vm550_vm2, %v547_v23 }
 0x1a8   : > { %1653 = vmatprep.mubr.msk.bf16.mxu1 %vm2078_vm0, %v2077_v0  ;;  %1652 = vmatpush3.bf16.msra.mxu1 %v549_v32 }
 0x1a9   : > { %872 = vrot.lane.b32.xlu1 %v547_v23, %s2081_s7  ;;  %874 = vrot.lane.b32.xlu0 %v548_v20, %s2081_s7 }
 0x1aa   : > { %1663 = vmatprep.subr.bf16.mxu1 %v2077_v0 }
 0x211   : > { %v658_v33 = vpop.permute.xlu0 %657  ;;  %v767_v35 = vpop.permute.xlu1 %766 }
 0x212   : > { %v663_v34 = vsel %vm550_vm2, %v658_v33, 0  ;;  %v772_v37 = vsel %vm550_vm2, %v767_v35, 0 }
 0x213   : > { %1658 = vmatpush3.bf16.xpose.msra.mxu0 %v663_v34 }
 0x214   : > { %1669 = vmatprep.subr.bf16.mxu0 %v2077_v0 }
 0x217   : > { %v655_v36 = vpop.permute.xlu0 %654  ;;  %v765_v39 = vpop.permute.xlu1 %764 }
 0x21a   : > { %1660 = vmatmul.mubr.msk.bf16.vlgmr.msra.gmra.mrb[8].mxu0 %vm550_vm2, %v655_v36 }
 0x21b   : > { %1670 = vmatpush3.bf16.xpose.msra.mxu0 %v772_v37  ;;  %1671 = vmatprep.mubr.msk.bf16.mxu0 %vm2078_vm0, %v2077_v0  ;;  %v875_v38 = vpop.permute.xlu0 %874  ;;  %v873_v41 = vpop.permute.xlu1 %872 }
 0x21c   : > { %1681 = vmatprep.subr.bf16.mxu0 %v2077_v0  ;;  %v880_v40 = vsel %vm550_vm2, %v875_v38, 0  ;;  %v2494_v38 = vsub.s32 3, %v2483_v28 }
 0x222   : > { %1672 = vmatmul.mubr.msk.bf16.vlgmr.msra.gmra.mrb[12].mxu0 %vm550_vm2, %v765_v39  ;;  %v2497_v39 = vsub.s32 2, %v2483_v28 }
 0x223   : > { %1682 = vmatpush3.bf16.xpose.msra.mxu0 %v880_v40  ;;  %1683 = vmatprep.mubr.msk.bf16.mxu0 %vm2078_vm0, %v2077_v0 }
 0x22a   : > { %1684 = vmatmul.mubr.msk.bf16.vlgmr.msra.gmra.mrb[16].mxu0 %vm550_vm2, %v873_v41 }
 0x27a   : > { %v591_v42 = vpop.f32.mrb[4].mxu1 }
 0x27b   : > { %v1649_v43 = vpop.f32.mrb[5].mxu1  ;;  %v598_v44 = vsel %vm597_vm3, %v591_v42, -inf }
 0x27c   : > { %599 = vmax.xlane.f32.xlu0 %v598_v44  ;;  %v594_v45 = vpop.f32.mrb[6].mxu1  ;;  %v2505_v43 = vsub.s32 4, %v2483_v28 }
 0x27d   : > { %v1650_v46 = vpop.f32.mrb[7].mxu1 }
 0x27e   : > { %v2510_v46 = vsub.s32 7, %v2483_v28 }
 0x2ed   : > { %v699_v47 = vpop.f32.mrb[8].mxu0 }
 0x2ee   : > { %v1661_v48 = vpop.f32.mrb[9].mxu0  ;;  %v705_v49 = vsel %vm597_vm3, %v699_v47, -inf }
 0x2ef   : > { %706 = vmax.xlane.f32.xlu1 %v705_v49  ;;  %v702_v50 = vpop.f32.mrb[10].mxu0 }
 0x2f0   : > { %v1662_v51 = vpop.f32.mrb[11].mxu0 }
 0x2f5   : > { %v808_v52 = vpop.f32.mrb[12].mxu0 }
 0x2f6   : > { %v1673_v53 = vpop.f32.mrb[13].mxu0  ;;  %v814_v54 = vsel %vm597_vm3, %v808_v52, -inf }
 0x2f7   : > { %815 = vmax.xlane.f32.xlu0 %v814_v54  ;;  %v811_v55 = vpop.f32.mrb[14].mxu0 }
 0x2f8   : > { %v1674_v56 = vpop.f32.mrb[15].mxu0 }
 0x2fd   : > { %v916_v57 = vpop.f32.mrb[16].mxu0 }
 0x2fe   : > { %v1685_v58 = vpop.f32.mrb[17].mxu0  ;;  %v922_v59 = vsel %vm597_vm3, %v916_v57, -inf }
 0x2ff   : > { %923 = vmax.xlane.f32.xlu0 %v922_v59  ;;  %v919_v60 = vpop.f32.mrb[18].mxu0 }
 0x300   : > { %716 = vrot.lane.b32.xlu1 %v549_v32, %s2080_s26  ;;  %v1686_v61 = vpop.f32.mrb[19].mxu0  ;;  %s1978_s26 = sshll.u32 %s2091_s28, 4  ;;  %s1979_s26 = int_to_ptr.vmem [resolvable:$false] %s1978_s26 }
 0x301   : > { %p1981_p13 = scmp.lt.s32.totalorder %s2577_s16, %s1979_s26 }
 0x304   : > { %932 = vrot.lane.b32.xlu1 %v549_v32, %s2081_s7  ;;  %s1980_s7 = scalar_lea.vmem %s1979_s26, 256 }
 0x309   : > { %v600_v62 = vpop.xlane.xlu0 %599 }
 0x30a   : > { %v601_v63 = vsub.f32 %v591_v42, %v600_v62  ;;  %v2502_v42 = vsub.s32 5, %v2483_v28 }
 0x30c   : > { %v602_v1 = vmul.f32 1.442695, %v601_v63 }
 0x30e   : > { %1814 = vpow2.f32 %v602_v1 }
 0x315   : > { %824 = vrot.lane.b32.xlu0 %v549_v32, %s2079_s24  ;;  %s1974_s24 = scalar_lea.vmem %s2577_s16, 128 }
 0x316   : > { %p1975_p4 = scmp.ne.s32.totalorder %s2577_s16, %s1974_s24  ;;  %p1982_p3 = scmp.lt.s32.totalorder %s1980_s7, %s1974_s24 }
 0x318   : > { %v1815_v2 = vpop.eup %1814  ;;  %p1976_p8 = pnand %p1975_p4, %p2278_p10  ;;  %p1983_p5 = por %p1982_p3, %p1981_p13 }
 0x319   : > { %v607_v3 = vpack.c.bf16 %v1815_v2, %v1815_v2  ;;  %v604_v4 = vsel %vm597_vm3, %v1815_v2, 0.0 }
 0x31a   : > { %p1977_p1 = pneg %p1976_p8 }
 0x31b   : > { %1654 = vmatmul.mubr.msk.bf16.vlgmr.msra.gmra.mrb[8].mxu1 %vm597_vm3, %v607_v3 }
 0x31c   : > { %1665 = vmatprep.mubr.msk.bf16.mxu1 %vm2078_vm0, %v2077_v0  ;;  %p1984_p11 = pnand %p1983_p5, %p1977_p1 }
 0x328   : > { %605 = vadd.xlane.f32.xlu1 %v604_v4 }
 0x37c   : > { %v707_v5 = vpop.xlane.xlu1 %706 }
 0x37d   : > { %v708_v6 = vsub.f32 %v699_v47, %v707_v5  ;;  %v2513_v47 = vsub.s32 6, %v2483_v28 }
 0x37f   : > { %v709_v7 = vmul.f32 1.442695, %v708_v6 }
 0x380   : > { %v717_v8 = vpop.permute.xlu1 %716 }
 0x381   : > { %1816 = vpow2.f32 %v709_v7  ;;  %1664 = vmatpush3.bf16.msra.mxu1 %v717_v8 }
 0x382   : > { %1675 = vmatprep.subr.bf16.mxu1 %v2077_v0 }
 0x384   : > { %v816_v9 = vpop.xlane.xlu0 %815  ;;  %v933_v22 = vpop.permute.xlu1 %932 }
 0x385   : > { %v817_v10 = vsub.f32 %v808_v52, %v816_v9 }
 0x387   : > { %v818_v11 = vmul.f32 1.442695, %v817_v10 }
 0x389   : > { %1818 = vpow2.f32 %v818_v11 }
 0x38b   : > { %v1817_v12 = vpop.eup %1816 }
 0x38c   : > { %v924_v13 = vpop.xlane.xlu0 %923  ;;  %v711_v14 = vsel %vm597_vm3, %v1817_v12, 0.0  ;;  %v714_v15 = vpack.c.bf16 %v1817_v12, %v1817_v12 }
 0x38d   : > { %v925_v16 = vsub.f32 %v916_v57, %v924_v13  ;;  %712 = vadd.xlane.f32.xlu0 %v711_v14 }
 0x38e   : > { %1666 = vmatmul.mubr.msk.bf16.vlgmr.msra.gmra.mrb[12].mxu1 %vm597_vm3, %v714_v15 }
 0x38f   : > { %v926_v17 = vmul.f32 1.442695, %v925_v16  ;;  %1677 = vmatprep.mubr.msk.bf16.mxu1 %vm2078_vm0, %v2077_v0 }
 0x390   : > { %v825_v18 = vpop.permute.xlu0 %824 }
 0x391   : > { %1820 = vpow2.f32 %v926_v17  ;;  %1676 = vmatpush3.bf16.msra.mxu1 %v825_v18 }
 0x392   : > { %1687 = vmatprep.subr.bf16.mxu1 %v2077_v0 }
 0x393   : > { %v1819_v19 = vpop.eup %1818 }
 0x394   : > { %v820_v20 = vsel %vm597_vm3, %v1819_v19, 0.0  ;;  %v823_v21 = vpack.c.bf16 %v1819_v19, %v1819_v19 }
 0x395   : > { %821 = vadd.xlane.f32.xlu0 %v820_v20 }
 0x396   : > { %1678 = vmatmul.mubr.msk.bf16.vlgmr.msra.gmra.mrb[16].mxu1 %vm597_vm3, %v823_v21 }
 0x397   : > { %1688 = vmatpush3.bf16.msra.mxu1 %v933_v22  ;;  %1689 = vmatprep.mubr.msk.bf16.mxu1 %vm2078_vm0, %v2077_v0 }
 0x39b   : > { %v1821_v23 = vpop.eup %1820 }
 0x39c   : > { %v928_v24 = vsel %vm597_vm3, %v1821_v23, 0.0  ;;  %v931_v25 = vpack.c.bf16 %v1821_v23, %v1821_v23 }
 0x39d   : > { %929 = vadd.xlane.f32.xlu1 %v928_v24 }
 0x39e   : > { %1690 = vmatmul.mubr.msk.bf16.vlgmr.msra.gmra.mrb[20].mxu1 %vm597_vm3, %v931_v25 }
 0x3b5   : > { %v606_v26 = vpop.xlane.xlu1 %605 }
 0x3b6   : > { %1822 = vrcp.f32 %v606_v26 }
 0x3c0   : > { %v1823_v31 = vpop.eup %1822 }
 0x3ee   : > { %v645_v0 = vpop.f32.mrb[8].mxu1 }
 0x3ef   : > { %v652_v32 = vmul.f32 %v1823_v31, %v645_v0  ;;  %v1655_v33 = vpop.f32.mrb[9].mxu1 }
 0x3f0   : > { %v648_v34 = vpop.f32.mrb[10].mxu1 }
 0x3f1   : > { %v1656_v35 = vpop.f32.mrb[11].mxu1  ;;  %v983_v36 = vrot.slane %v652_v32, %v2486_v29  ;;  %v990_v37 = vrot.slane %v652_v32, %v2489_v30  ;;  %v1004_v40 = vrot.slane %v652_v32, %v2494_v38  ;;  %v997_v41 = vrot.slane %v652_v32, %v2497_v39 }
 0x3f2   : > { %v1018_v44 = vrot.slane %v652_v32, %v2502_v42  ;;  %v1011_v45 = vrot.slane %v652_v32, %v2505_v43  ;;  %v1032_v48 = vrot.slane %v652_v32, %v2510_v46  ;;  %v1025_v49 = vrot.slane %v652_v32, %v2513_v47 }
 0x3f3   : > { %985 = vbcast.lane.b32.xlu0 %v983_v36, 256  ;;  %992 = vbcast.lane.b32.xlu1 %v990_v37, 256 }
 0x3f7   : > { %1006 = vbcast.lane.b32.xlu0 %v1004_v40, 256  ;;  %999 = vbcast.lane.b32.xlu1 %v997_v41, 256 }
 0x3fb   : > { %1020 = vbcast.lane.b32.xlu0 %v1018_v44, 256  ;;  %1013 = vbcast.lane.b32.xlu1 %v1011_v45, 256 }
 0x3ff   : > { %1034 = vbcast.lane.b32.xlu0 %v1032_v48, 256  ;;  %1027 = vbcast.lane.b32.xlu1 %v1025_v49, 256 }
 0x41a   : > { %v713_v50 = vpop.xlane.xlu0 %712 }
 0x41b   : > { %1824 = vrcp.f32 %v713_v50 }
 0x422   : > { %v822_v53 = vpop.xlane.xlu0 %821 }
 0x423   : > { %1826 = vrcp.f32 %v822_v53 }
 0x425   : > { %v1825_v51 = vpop.eup %1824 }
 0x42a   : > { %v930_v10 = vpop.xlane.xlu1 %929 }
 0x42b   : > { %1828 = vrcp.f32 %v930_v10 }
 0x42d   : > { %v1827_v5 = vpop.eup %1826 }
 0x435   : > { %v1829_v20 = vpop.eup %1828 }
 0x461   : > { %v756_v52 = vpop.f32.mrb[12].mxu1 }
 0x462   : > { %v763_v54 = vmul.f32 %v1825_v51, %v756_v52  ;;  %v1667_v55 = vpop.f32.mrb[13].mxu1 }
 0x463   : > { %v759_v56 = vpop.f32.mrb[14].mxu1 }
 0x464   : > { %v1668_v57 = vpop.f32.mrb[15].mxu1  ;;  %v1046_v58 = vrot.slane %v763_v54, %v2489_v30  ;;  %v1039_v59 = vrot.slane %v763_v54, %v2486_v29  ;;  %v1060_v60 = vrot.slane %v763_v54, %v2494_v38  ;;  %v1053_v61 = vrot.slane %v763_v54, %v2497_v39 }
 0x465   : > { %v1074_v3 = vrot.slane %v763_v54, %v2502_v42  ;;  %v1067_v4 = vrot.slane %v763_v54, %v2505_v43  ;;  %v1088_v7 = vrot.slane %v763_v54, %v2510_v46  ;;  %v1081_v8 = vrot.slane %v763_v54, %v2513_v47  ;;  %v986_v33 = vpop.permute.xlu0 %985 }
 0x466   : > { %1048 = vbcast.lane.b32.xlu0 %v1046_v58, 256  ;;  %1041 = vbcast.lane.b32.xlu1 %v1039_v59, 256  ;;  %v2082_v56 = vmov 1983009808   ;;  %v2083_v58 = vmov 1934713408  }
 0x467   : > { %v1234_v57 = vunpack.c.l.s4 %v2082_v56  ;;  %v1298_v59 = vunpack.c.l.s4 %v2083_v58 }
 0x469   : > { %v864_v62 = vpop.f32.mrb[16].mxu1  ;;  %v1007_v35 = vpop.permute.xlu0 %1006 }
 0x46a   : > { %v1679_v63 = vpop.f32.mrb[17].mxu1  ;;  %1062 = vbcast.lane.b32.xlu0 %v1060_v60, 256  ;;  %1055 = vbcast.lane.b32.xlu1 %v1053_v61, 256  ;;  %v871_v6 = vmul.f32 %v1827_v5, %v864_v62 }
 0x46b   : > { %v867_v1 = vpop.f32.mrb[18].mxu1 }
 0x46c   : > { %v1680_v2 = vpop.f32.mrb[19].mxu1  ;;  %v1102_v14 = vrot.slane %v871_v6, %v2489_v30  ;;  %v1095_v15 = vrot.slane %v871_v6, %v2486_v29  ;;  %v1116_v16 = vrot.slane %v871_v6, %v2494_v38  ;;  %v1109_v17 = vrot.slane %v871_v6, %v2497_v39 }
 0x46d   : > { %v1130_v18 = vrot.slane %v871_v6, %v2502_v42  ;;  %v1123_v19 = vrot.slane %v871_v6, %v2505_v43  ;;  %v1144_v22 = vrot.slane %v871_v6, %v2510_v46  ;;  %v1137_v23 = vrot.slane %v871_v6, %v2513_v47  ;;  %v1021_v37 = vpop.permute.xlu0 %1020 }
 0x46e   : > { %1076 = vbcast.lane.b32.xlu0 %v1074_v3, 256  ;;  %1069 = vbcast.lane.b32.xlu1 %v1067_v4, 256  ;;  %v1235_v1 = vunpack.c.0.s8 %v1234_v57  ;;  %v1299_v2 = vunpack.c.0.s8 %v1298_v59 }
 0x471   : > { %v972_v9 = vpop.f32.mrb[20].mxu1 }
 0x472   : > { %v1691_v11 = vpop.f32.mrb[21].mxu1  ;;  %1090 = vbcast.lane.b32.xlu0 %v1088_v7, 256  ;;  %1083 = vbcast.lane.b32.xlu1 %v1081_v8, 256  ;;  %v979_v21 = vmul.f32 %v1829_v20, %v972_v9  ;;  %v1302_v20 = vsub.s32 %v1299_v2, %v2483_v28 }
 0x473   : > { %v975_v12 = vpop.f32.mrb[22].mxu1 }
 0x474   : > { %v1692_v13 = vpop.f32.mrb[23].mxu1  ;;  %v1158_v24 = vrot.slane %v979_v21, %v2489_v30  ;;  %v1151_v25 = vrot.slane %v979_v21, %v2486_v29  ;;  %v1172_v26 = vrot.slane %v979_v21, %v2494_v38  ;;  %v1165_v27 = vrot.slane %v979_v21, %v2497_v39  ;;  %v993_v29 = vpop.permute.xlu1 %992 }
 0x475   : > { %v1186_v31 = vrot.slane %v979_v21, %v2502_v42  ;;  %v1179_v0 = vrot.slane %v979_v21, %v2505_v43  ;;  %v1200_v32 = vrot.slane %v979_v21, %v2510_v46  ;;  %v1193_v30 = vrot.slane %v979_v21, %v2513_v47  ;;  %v1035_v39 = vpop.permute.xlu0 %1034 }
 0x476   : > { %1104 = vbcast.lane.b32.xlu0 %v1102_v14, 256  ;;  %1097 = vbcast.lane.b32.xlu1 %v1095_v15, 256  ;;  %v1238_v15 = vsub.s32 %v1235_v1, %v2483_v28 }
 0x478   : > { %v1000_v34 = vpop.permute.xlu1 %999 }
 0x47a   : > { %1118 = vbcast.lane.b32.xlu0 %v1116_v16, 256  ;;  %1111 = vbcast.lane.b32.xlu1 %v1109_v17, 256 }
 0x47c   : > { %v1014_v36 = vpop.permute.xlu1 %1013 }
 0x47e   : > { %1132 = vbcast.lane.b32.xlu0 %v1130_v18, 256  ;;  %1125 = vbcast.lane.b32.xlu1 %v1123_v19, 256 }
 0x480   : > { %v1028_v38 = vpop.permute.xlu1 %1027 }
 0x482   : > { %1146 = vbcast.lane.b32.xlu0 %v1144_v22, 256  ;;  %1139 = vbcast.lane.b32.xlu1 %v1137_v23, 256 }
 0x486   : > { %1160 = vbcast.lane.b32.xlu0 %v1158_v24, 256  ;;  %1153 = vbcast.lane.b32.xlu1 %v1151_v25, 256 }
 0x48a   : > { %1174 = vbcast.lane.b32.xlu0 %v1172_v26, 256  ;;  %1167 = vbcast.lane.b32.xlu1 %v1165_v27, 256 }
 0x48e   : > { %1188 = vbcast.lane.b32.xlu0 %v1186_v31, 256  ;;  %1181 = vbcast.lane.b32.xlu1 %v1179_v0, 256 }
 0x492   : > { %1202 = vbcast.lane.b32.xlu0 %v1200_v32, 256  ;;  %1195 = vbcast.lane.b32.xlu1 %v1193_v30, 256 }
 0x4d8   : > { %v1042_v40 = vpop.permute.xlu1 %1041  ;;  %v1049_v41 = vpop.permute.xlu0 %1048 }
 0x4d9   : > { %v1205_v3 = vsel %vm1204_vm4, %v986_v33, %v1042_v40  ;;  %v1206_v4 = vsel %vm1204_vm4, %v993_v29, %v1049_v41 }
 0x4dc   : > { %v1056_v42 = vpop.permute.xlu1 %1055  ;;  %v1063_v43 = vpop.permute.xlu0 %1062 }
 0x4dd   : > { %v1207_v62 = vsel %vm1204_vm4, %v1000_v34, %v1056_v42  ;;  %v1208_v63 = vsel %vm1204_vm4, %v1007_v35, %v1063_v43 }
 0x4e0   : > { %v1070_v44 = vpop.permute.xlu1 %1069  ;;  %v1077_v45 = vpop.permute.xlu0 %1076 }
 0x4e1   : > { %v1209_v21 = vsel %vm1204_vm4, %v1014_v36, %v1070_v44  ;;  %v1210_v22 = vsel %vm1204_vm4, %v1021_v37, %v1077_v45 }
 0x4e4   : > { %v1084_v48 = vpop.permute.xlu1 %1083  ;;  %v1091_v46 = vpop.permute.xlu0 %1090 }
 0x4e5   : > { %v1211_v23 = vsel %vm1204_vm4, %v1028_v38, %v1084_v48  ;;  %v1212_v24 = vsel %vm1204_vm4, %v1035_v39, %v1091_v46 }
 0x4e8   : > { %v1098_v49 = vpop.permute.xlu1 %1097  ;;  %v1105_v47 = vpop.permute.xlu0 %1104 }
 0x4e9   : > { %v1214_v9 = vsel %vm1213_vm5, %v1205_v3, %v1098_v49  ;;  %v1215_v10 = vsel %vm1213_vm5, %v1206_v4, %v1105_v47 }
 0x4ec   : > { %v1112_v50 = vpop.permute.xlu1 %1111  ;;  %v1119_v51 = vpop.permute.xlu0 %1118 }
 0x4ed   : > { %v1216_v5 = vsel %vm1213_vm5, %v1207_v62, %v1112_v50  ;;  %v1217_v6 = vsel %vm1213_vm5, %v1208_v63, %v1119_v51 }
 0x4f0   : > { %v1126_v52 = vpop.permute.xlu1 %1125  ;;  %v1133_v53 = vpop.permute.xlu0 %1132 }
 0x4f1   : > { %v1218_v0 = vsel %vm1213_vm5, %v1209_v21, %v1126_v52  ;;  %v1219_v32 = vsel %vm1213_vm5, %v1210_v22, %v1133_v53 }
 0x4f4   : > { %v1140_v54 = vpop.permute.xlu1 %1139  ;;  %v1147_v55 = vpop.permute.xlu0 %1146 }
 0x4f5   : > { %v1220_v30 = vsel %vm1213_vm5, %v1211_v23, %v1140_v54  ;;  %v1221_v28 = vsel %vm1213_vm5, %v1212_v24, %v1147_v55 }
 0x4f8   : > { %v1154_v60 = vpop.permute.xlu1 %1153  ;;  %v1161_v61 = vpop.permute.xlu0 %1160 }
 0x4f9   : > { %v1223_v13 = vsel %vm1222_vm6, %v1214_v9, %v1154_v60  ;;  %v1224_v14 = vsel %vm1222_vm6, %v1215_v10, %v1161_v61 }
 0x4fc   : > { %v1168_v7 = vpop.permute.xlu1 %1167  ;;  %v1175_v8 = vpop.permute.xlu0 %1174 }
 0x4fd   : > { %v1225_v11 = vsel %vm1222_vm6, %v1216_v5, %v1168_v7  ;;  %v1226_v12 = vsel %vm1222_vm6, %v1217_v6, %v1175_v8 }
 0x4fe   : > { %v1231_v16 = vcombine.low %v1223_v13, %v1225_v11  ;;  %v1247_v17 = vcombine.low %v1224_v14, %v1226_v12  ;;  %v1232_v25 = vcombine.high %v1223_v13, %v1225_v11  ;;  %v1248_v27 = vcombine.high %v1224_v14, %v1226_v12 }
 0x500   : > { %v1182_v18 = vpop.permute.xlu1 %1181  ;;  %v1189_v19 = vpop.permute.xlu0 %1188  ;;  %v1239_v26 = vrot.slane %v1231_v16, %v1238_v15  ;;  %v1255_v31 = vrot.slane %v1247_v17, %v1238_v15  ;;  %v1246_v42 = vrot.slane %v1232_v25, %v1238_v15  ;;  %v1262_v43 = vrot.slane %v1248_v27, %v1238_v15 }
 0x501   : > { %v1227_v34 = vsel %vm1222_vm6, %v1218_v0, %v1182_v18  ;;  %v1228_v35 = vsel %vm1222_vm6, %v1219_v32, %v1189_v19 }
 0x502   : > { %v1295_v44 = vcombine.low %v1239_v26, %v1255_v31  ;;  %v1296_v45 = vcombine.high %v1239_v26, %v1255_v31  ;;  %v1311_v53 = vcombine.low %v1246_v42, %v1262_v43  ;;  %v1312_v63 = vcombine.high %v1246_v42, %v1262_v43 }
 0x504   : > { %v1196_v29 = vpop.permute.xlu1 %1195  ;;  %v1203_v33 = vpop.permute.xlu0 %1202  ;;  %v1310_v54 = vrot.slane %v1296_v45, %v1302_v20  ;;  %v1303_v56 = vrot.slane %v1295_v44, %v1302_v20  ;;  %v1319_v1 = vrot.slane %v1311_v53, %v1302_v20  ;;  %v1326_v5 = vrot.slane %v1312_v63, %v1302_v20 }
 0x505   : > { %v1229_v36 = vsel %vm1222_vm6, %v1220_v30, %v1196_v29  ;;  %v1230_v37 = vsel %vm1222_vm6, %v1221_v28, %v1203_v33 }
 0x506   : > { %v1263_v38 = vcombine.low %v1227_v34, %v1229_v36  ;;  %v1264_v39 = vcombine.high %v1227_v34, %v1229_v36  ;;  %v1279_v40 = vcombine.low %v1228_v35, %v1230_v37  ;;  %v1280_v41 = vcombine.high %v1228_v35, %v1230_v37 }
 0x508   : > { %v1271_v48 = vrot.slane %v1263_v38, %v1238_v15  ;;  %v1278_v46 = vrot.slane %v1264_v39, %v1238_v15  ;;  %v1287_v49 = vrot.slane %v1279_v40, %v1238_v15  ;;  %v1294_v47 = vrot.slane %v1280_v41, %v1238_v15 }
 0x50a   : > { %v1327_v50 = vcombine.low %v1271_v48, %v1287_v49  ;;  %v1328_v51 = vcombine.high %v1271_v48, %v1287_v49  ;;  %v1343_v52 = vcombine.low %v1278_v46, %v1294_v47  ;;  %v1344_v58 = vcombine.high %v1278_v46, %v1294_v47 }
 0x50c   : > { %v1342_v55 = vrot.slane %v1328_v51, %v1302_v20  ;;  %v1335_v57 = vrot.slane %v1327_v50, %v1302_v20  ;;  %v1351_v61 = vrot.slane %v1343_v52, %v1302_v20  ;;  %v1358_v4 = vrot.slane %v1344_v58, %v1302_v20 }
 0x50e   : > { %v1361_v59 = vcombine.low %v1310_v54, %v1342_v55  ;;  %v1360_v60 = vcombine.high %v1303_v56, %v1335_v57  ;;  %v1359_v62 = vcombine.low %v1303_v56, %v1335_v57  ;;  %v1363_v2 = vcombine.low %v1319_v1, %v1351_v61 }
 0x50f   : > { %v1362_v3 = vcombine.high %v1310_v54, %v1342_v55  ;;  %v1365_v6 = vcombine.low %v1326_v5, %v1358_v4  ;;  %v1364_v7 = vcombine.high %v1319_v1, %v1351_v61  ;;  %v1366_v8 = vcombine.high %v1326_v5, %v1358_v4 }
 0x510   : > { %1372 = vrot.lane.b32.xlu0 %v1361_v59, %s2084_s17  ;;  %1368 = vrot.lane.b32.xlu1 %v1360_v60, %s2085_s9 }
 0x514   : > { %1380 = vrot.lane.b32.xlu0 %v1363_v2, %s2086_s30  ;;  %1376 = vrot.lane.b32.xlu1 %v1362_v3, %s2087_s13 }
 0x518   : > { %1388 = vrot.lane.b32.xlu0 %v1365_v6, %s2088_s10  ;;  %1384 = vrot.lane.b32.xlu1 %v1364_v7, %s2089_s2 }
 0x51c   : > { %1392 = vrot.lane.b32.xlu1 %v1366_v8, %s2090_s25 }
 0x582   : > { %v1373_v9 = vpop.permute.xlu0 %1372  ;;  %v1369_v10 = vpop.permute.xlu1 %1368 }
 0x583   : > { %v1396_v11 = vsel %vm1395_vm7, %v1359_v62, %v1369_v10 }
 0x584   : > { %v1397_v14 = vsel %vm550_vm2, %v1396_v11, %v1373_v9 }
 0x586   : > { %v1381_v12 = vpop.permute.xlu0 %1380  ;;  %v1377_v13 = vpop.permute.xlu1 %1376 }
 0x587   : > { %v1399_v15 = vsel %vm1398_vm8, %v1397_v14, %v1377_v13 }
 0x588   : > { %v1400_v17 = vsel %vm597_vm3, %v1399_v15, %v1381_v12 }
 0x58a   : > { %v1385_v16 = vpop.permute.xlu1 %1384  ;;  %v1389_v18 = vpop.permute.xlu0 %1388 }
 0x58b   : > { %v1402_v19 = vsel %vm1401_vm9, %v1400_v17, %v1385_v16 }
 0x58c   : > { %v1404_v21 = vsel %vm1403_vm10, %v1402_v19, %v1389_v18 }
 0x58e   : > { %v1393_v20 = vpop.permute.xlu1 %1392 }
 0x58f   : > { %v1406_v22 = vsel %vm1405_vm11, %v1404_v21, %v1393_v20 }
 0x590   : > { %1407 = vst.msk [vmem:[%s339_s8] sm:$0xff] %vm366_vm1, %v1406_v22 }
 0x591   : > { %1987 = shalt.err (!%p1984_p11)
}
 0x592   : > { %s1988_s12 = scalar_lea.hbm %s2575_s14, 128  ;;  %s1992_s30 = scalar_lea.hbm %s2630_s5, 256 }
 0x593   : > { %p1989_p12 = scmp.ne.s32.totalorder %s2575_s14, %s1988_s12  ;;  %p1993_p9 = scmp.lt.u32.totalorder %s2575_s14, %s2630_s5 }
 0x594   : > { %p1994_p0 = scmp.lt.u32.totalorder %s1992_s30, %s1988_s12  ;;  %p1996_p4 = scmp.lt.u32.totalorder %s1988_s12, %s2575_s14 }
 0x595   : > { %p1990_p6 = pnand %p1989_p12, %p2278_p10 }
 0x596   : > { %p1995_p2 = por %p1994_p0, %p1993_p9 }
 0x597   : > { %p1991_p7 = pneg %p1990_p6 }
 0x598   : > { %p1997_p8 = por %p1996_p4, %p1995_p2 }
 0x59a   : > { %p1998_p1 = pnand %p1997_p8, %p1991_p7 }
 0x59c   : > { %2001 = shalt.err (!%p1998_p1)
}
 0x59d   : > { %1709 = dma.vmem_to_hbm [thread:$0]  (%p2278_p10), %s2577_s16, 128, %s2575_s14, %s1409_s21  }
 0x59e PF: > { %s2659_s2 = sld [smem:[#allocation19_spill]]  ;;  %s1435_s25 = sand.u32 1, %s2048_s18  }
 0x59f   : > { %p2661_p3 = scmp.ge.s32.totalorder %s2068_s23, 2  ;;  %s1436_s29 = scalar_lea.sflag [#allocation6], %s1435_s25 }
 0x5a4   : > { %p2660_p13 = scmp.ne.s32.totalorder %s2659_s2, 0 }
 0x5a6   : > { %p1729_p5 = pnand %p2661_p3, %p2660_p13 }
 0x5a8   : > { %2043 = dma.done.wait (!%p1729_p5), %s1436_s29, 128  }
 0x5a9   : > { %2045 = vsyncadd (!%p1729_p5), %s1436_s29, 4294967168  ;;  %s25_s23 = sadd.s32 1, %s2068_s23   ;;  %s2662_s18 = smov %s2052_s19 }
 0x5aa   : > { %p22_p11 = scmp.ge.s32.totalorder %s25_s23, 4   ;;  %s2663_s19 = smov %s2056_s20 }
 0x5ab   : > { %s2664_s20 = smov %s2293_s15  ;;  %s2665_s21 = smov %s2064_s22 }
 0x5ac   : > { %s2666_s22 = smov %s2668_s6  ;;  %24 = sbr.rel (!%p22_p11) target bundleno = 12 (0xc), region = 114 }
 0x5b3   :  { %1441 = vsyncpa [#allocation5], 1 }
 0x5b4   :  { %1443 = vsyncpa [#allocation5 + $0x1], 1 }
 0x5b5   :  { %1444 = vsyncpa [#allocation8], 1 }
 0x5b6   :  { %1446 = vsyncpa [#allocation8 + $0x1], 1 }
 0x5b7   :  { %1447 = vsyncpa [#allocation11], 1 }
 0x5b8   :  { %1448 = vsyncpa [#allocation6], 1 }
 0x5b9   :  { %1450 = vsyncpa [#allocation6 + $0x1], 1 }

</bundles_post_ra>
